<compile_context>
chip_gen: v6e
topology: v6e:2x2x1
jax: 0.10.0
libtpu: 0.0.40
codegen_flags: <defaults>
</compile_context>

<pallas_src>
import functools
import math

import jax
import jax.numpy as jnp
from jax.experimental import pallas as pl
from jax.experimental.pallas import tpu as pltpu

_BN_EPS = 1e-5


# ---------------------------------------------------------------------------
# Pallas kernels: bf16 MXU matmul, f32 accumulate, fused bias/residual/ReLU
# ---------------------------------------------------------------------------
def _matmul_bias_kernel(a_ref, b_ref, bias_ref, o_ref, acc_ref, *, relu):
    @pl.when(pl.program_id(1) == 0)
    def _init():
        acc_ref[...] = jnp.zeros_like(acc_ref)

    acc_ref[...] += jnp.dot(a_ref[...], b_ref[...],
                            preferred_element_type=jnp.float32)

    @pl.when(pl.program_id(1) == pl.num_programs(1) - 1)
    def _finalize():
        out = acc_ref[...] + bias_ref[...]
        if relu:
            out = jnp.maximum(out, 0.0)
        o_ref[...] = out.astype(o_ref.dtype)


def _matmul_bias_add_relu_kernel(a_ref, b_ref, bias_ref, r_ref, o_ref, acc_ref):
    @pl.when(pl.program_id(1) == 0)
    def _init():
        acc_ref[...] = jnp.zeros_like(acc_ref)

    acc_ref[...] += jnp.dot(a_ref[...], b_ref[...],
                            preferred_element_type=jnp.float32)

    @pl.when(pl.program_id(1) == pl.num_programs(1) - 1)
    def _finalize():
        out = acc_ref[...] + bias_ref[...] + r_ref[...].astype(jnp.float32)
        o_ref[...] = jnp.maximum(out, 0.0).astype(o_ref.dtype)


# ---------------------------------------------------------------------------
# Tiling helpers
# ---------------------------------------------------------------------------
def _round_up(x, m):
    return ((x + m - 1) // m) * m


def _pad2(x, rows, cols):
    r, c = x.shape
    if r == rows and c == cols:
        return x
    return jnp.pad(x, ((0, rows - r), (0, cols - c)))


def _tile_vmem_bytes(tm, tk, npad, has_residual, out_bytes):
    b = 2 * (tm * tk * 2)              # A tile (bf16, double-buffered)
    b += 2 * (tk * npad * 2)           # B tile (bf16, double-buffered)
    b += 2 * (npad * 4)                # bias row (f32)
    b += 2 * (tm * npad * out_bytes)   # output tile
    b += tm * npad * 4                 # f32 accumulator scratch
    if has_residual:
        b += 2 * (tm * npad * 2)       # residual tile (bf16)
    return b


def _pick_tm(m, tk, npad, has_residual, out_bytes):
    budget = 28 * 1024 * 1024          # conservative: fits v7x 64 MiB VMEM
    cands = (512, 256, 128, 64, 32, 16)
    fitting = [c for c in cands
               if _tile_vmem_bytes(c, tk, npad, has_residual, out_bytes) <= budget]
    if not fitting:
        fitting = [16]
    # Prefer the largest tile that still gives >= 2 M-steps (v7x megacore).
    for c in fitting:
        if (m + c - 1) // c >= 2:
            return c
    return fitting[-1]


# ---------------------------------------------------------------------------
# Fused matmul:  out = [relu]((A @ B) + bias [+ residual])
# ---------------------------------------------------------------------------
def fused_matmul(a, b, bias, residual=None, relu=True, out_dtype=jnp.bfloat16):
    m, k = a.shape
    kb, n = b.shape
    assert k == kb
    if residual is not None:
        assert residual.shape == (m, n)

    npad = _round_up(n, 128)                      # lane-dense stores
    if k <= 512:
        kpad, tk = k, k                           # single K block (full dim)
    else:
        tk = 512
        kpad = _round_up(k, tk)

    out_bytes = jnp.dtype(out_dtype).itemsize
    tm = _pick_tm(m, tk, npad, residual is not None, out_bytes)
    mpad = _round_up(m, tm)

    a_p = _pad2(a.astype(jnp.bfloat16), mpad, kpad)
    b_p = _pad2(b.astype(jnp.bfloat16), kpad, npad)
    bias_p = _pad2(bias.reshape(1, n).astype(jnp.float32), 1, npad)

    in_specs = [
        pl.BlockSpec((tm, tk), lambda i, kk: (i, kk)),
        pl.BlockSpec((tk, npad), lambda i, kk: (kk, 0)),
        pl.BlockSpec((1, npad), lambda i, kk: (0, 0)),
    ]
    args = [a_p, b_p, bias_p]
    if residual is not None:
        in_specs.append(pl.BlockSpec((tm, npad), lambda i, kk: (i, 0)))
        args.append(_pad2(residual.astype(jnp.bfloat16), mpad, npad))
        kernel = _matmul_bias_add_relu_kernel
    else:
        kernel = functools.partial(_matmul_bias_kernel, relu=relu)

    grid = (mpad // tm, kpad // tk)
    bytes_accessed = (mpad * kpad * 2 + kpad * npad * 2 * grid[0]
                      + mpad * npad * out_bytes + npad * 4
                      + (mpad * npad * 2 if residual is not None else 0))
    cost = pl.CostEstimate(flops=2 * mpad * kpad * npad,
                           transcendentals=0,
                           bytes_accessed=int(bytes_accessed))

    out = pl.pallas_call(
        kernel,
        out_shape=jax.ShapeDtypeStruct((mpad, npad), out_dtype),
        grid=grid,
        in_specs=in_specs,
        out_specs=pl.BlockSpec((tm, npad), lambda i, kk: (i, 0)),
        scratch_shapes=[pltpu.VMEM((tm, npad), jnp.float32)],
        compiler_params=pltpu.CompilerParams(
            dimension_semantics=("parallel", "arbitrary"),
            vmem_limit_bytes=48 * 1024 * 1024),
        cost_estimate=cost,
    )(*args)
    return out[:m, :n]


# ---------------------------------------------------------------------------
# JAX glue: im2col (bf16, fused transpose), weight / BN folding, shortcut
# ---------------------------------------------------------------------------
def _im2col(x, kh, kw, stride, pad, *, channels_last, dtype=jnp.bfloat16):
    """(N*Ho*Wo, kh*kw*C) bf16 patches, (i, j, c) tap order.

    channels_last=False takes NCHW input and fuses the NHWC transpose into the
    per-tap slices (no separate full-tensor NHWC materialization).
    """
    if channels_last:
        n, h, w, c = x.shape
        xp = jnp.pad(x.astype(dtype), ((0, 0), (pad, pad), (pad, pad), (0, 0)))
    else:
        n, c, h, w = x.shape
        xp = jnp.pad(x.astype(dtype), ((0, 0), (0, 0), (pad, pad), (pad, pad)))
    ho = (h + 2 * pad - kh) // stride + 1
    wo = (w + 2 * pad - kw) // stride + 1
    cols = []
    for i in range(kh):
        for j in range(kw):
            if channels_last:
                tap = xp[:, i:i + stride * ho:stride, j:j + stride * wo:stride, :]
            else:
                tap = xp[:, :, i:i + stride * ho:stride, j:j + stride * wo:stride]
                tap = jnp.transpose(tap, (0, 2, 3, 1))
            cols.append(tap)
    patches = jnp.concatenate(cols, axis=-1)          # (N, Ho, Wo, kh*kw*C)
    return patches.reshape(n * ho * wo, kh * kw * c), (n, ho, wo)


def _conv_weight_matrix_bn_folded(w_oihw, bn):
    # (Cout, Cin, kh, kw) -> (kh*kw*Cin, Cout) with the BN scale folded in.
    cout, cin, kh, kw = w_oihw.shape
    gamma, beta, mean, var = bn
    scale = gamma / jnp.sqrt(var + _BN_EPS)
    bias = beta - mean * scale
    w_mat = jnp.transpose(w_oihw, (2, 3, 1, 0)).reshape(kh * kw * cin, cout)
    return w_mat * scale[None, :], bias


@functools.partial(jax.jit, static_argnames=("first_stride", "projection"))
def basic_block_forward(x_nchw, params, first_stride, projection=True):
    """Pallas-backed equivalent of BasicBlock.forward. Input/output are NCHW f32."""
    n, cin, h, w = x_nchw.shape
    cout = params["w1"].shape[0]

    # conv1 + bn1 + relu  (fused Pallas matmul)
    a1, (_, ho, wo) = _im2col(x_nchw, 3, 3, first_stride, 1, channels_last=False)
    w1, b1 = _conv_weight_matrix_bn_folded(params["w1"], params["bn1"])
    out1 = fused_matmul(a1, w1, b1, relu=True, out_dtype=jnp.bfloat16)

    # shortcut
    if first_stride != 1 or cin != cout:
        if projection:
            xs = jnp.transpose(x_nchw[:, :, ::first_stride, ::first_stride],
                               (0, 2, 3, 1))
            a_sc = xs.reshape(-1, cin)
            w_sc, b_sc = _conv_weight_matrix_bn_folded(params["w_sc"], params["bn_sc"])
            short = fused_matmul(a_sc, w_sc, b_sc, relu=False, out_dtype=jnp.bfloat16)
        else:
            # PaddedIdentity: ::2 spatial subsample + zero channel padding (glue only)
            p = cout // 4
            xs = jnp.pad(x_nchw[:, :, ::2, ::2], ((0, 0), (p, p), (0, 0), (0, 0)))
            short = jnp.transpose(xs, (0, 2, 3, 1)).reshape(
                -1, xs.shape[1]).astype(jnp.bfloat16)
    else:
        short = jnp.transpose(x_nchw, (0, 2, 3, 1)).reshape(-1, cin).astype(jnp.bfloat16)

    # conv2 + bn2 + residual add + relu  (fused Pallas matmul)
    a2, _ = _im2col(out1.reshape(n, ho, wo, cout), 3, 3, 1, 1, channels_last=True)
    w2, b2 = _conv_weight_matrix_bn_folded(params["w2"], params["bn2"])
    out2 = fused_matmul(a2, w2, b2, residual=short, relu=True, out_dtype=jnp.bfloat16)

    out = out2.reshape(n, ho, wo, cout)
    return jnp.transpose(out, (0, 3, 1, 2)).astype(jnp.float32)     # NCHW


# ---------------------------------------------------------------------------
# Pure-JAX f32 reference (lax.conv) for correctness checking
# ---------------------------------------------------------------------------
def _reference(x_nchw, params, stride, projection):
    def conv(x, w, s, p):
        return jax.lax.conv_general_dilated(
            x, w, (s, s), [(p, p), (p, p)],
            dimension_numbers=("NCHW", "OIHW", "NCHW"))

    def bn(x, prm):
        g, b, m, v = prm
        inv = g / jnp.sqrt(v + _BN_EPS)
        return x * inv[None, :, None, None] + (b - m * inv)[None, :, None, None]

    cin = x_nchw.shape[1]
    cout = params["w1"].shape[0]
    out = jax.nn.relu(bn(conv(x_nchw, params["w1"], stride, 1), params["bn1"]))
    out = bn(conv(out, params["w2"], 1, 1), params["bn2"])
    if stride != 1 or cin != cout:
        if projection:
            sc = bn(conv(x_nchw, params["w_sc"], stride, 0), params["bn_sc"])
        else:
            xs = x_nchw[:, :, ::2, ::2]
            p = cout // 4
            sc = jnp.pad(xs, ((0, 0), (p, p), (0, 0), (0, 0)))
    else:
        sc = x_nchw
    return jax.nn.relu(out + sc)


# ---------------------------------------------------------------------------
def _init_params(key, cin, cout):
    ks = jax.random.split(key, 12)

    def bn_params(k0, k1, k2, k3, c):
        gamma = 1.0 + 0.1 * jax.random.normal(k0, (c,), jnp.float32)
        beta = 0.1 * jax.random.normal(k1, (c,), jnp.float32)
        mean = 0.1 * jax.random.normal(k2, (c,), jnp.float32)
        var = 0.5 + jnp.abs(jax.random.normal(k3, (c,), jnp.float32))
        return (gamma, beta, mean, var)

    fan1 = cin * 9
    fan2 = cout * 9
    return {
        "w1": jax.random.normal(ks[0], (cout, cin, 3, 3), jnp.float32) / math.sqrt(fan1),
        "bn1": bn_params(ks[1], ks[2], ks[3], ks[4], cout),
        "w2": jax.random.normal(ks[5], (cout, cout, 3, 3), jnp.float32) / math.sqrt(fan2),
        "bn2": bn_params(ks[6], ks[7], ks[8], ks[9], cout),
        "w_sc": jax.random.normal(ks[10], (cout, cin, 1, 1), jnp.float32) / math.sqrt(cin),
        "bn_sc": bn_params(ks[11], ks[1], ks[5], ks[10], cout),
    }


if __name__ == "__main__":
    key = jax.random.PRNGKey(0)
    k_x, k_p = jax.random.split(key)

    # Small shapes: batch=2, Cin=4, Cout=8, 16x16 spatial, stride-2 projection block.
    N, CIN, COUT, H, W, STRIDE = 2, 4, 8, 16, 16, 2
    x = jax.random.normal(k_x, (N, CIN, H, W), jnp.float32)
    params = _init_params(k_p, CIN, COUT)

    out = basic_block_forward(x, params, first_stride=STRIDE, projection=True)
    out = jax.block_until_ready(out)

    ref = _reference(x, params, STRIDE, projection=True)
    assert out.shape == (N, COUT, H // STRIDE, W // STRIDE), out.shape
    # bf16 MXU operands + bf16 intermediates -> tolerance sized for bf16 precision.
    assert jnp.allclose(out, ref, atol=5e-2, rtol=5e-2), float(jnp.max(jnp.abs(out - ref)))

    print("KERNEL_OK")
</pallas_src>

<mosaic_0001>
module attributes {stable_mosaic.version = 11 : i64} {
  func.func @_matmul_bias_kernel(%arg0: i32, %arg1: i32, %arg2: memref<64x4xbf16, #tpu.memory_space<vmem>>, %arg3: memref<4x128xbf16, #tpu.memory_space<vmem>>, %arg4: memref<1x128xf32, #tpu.memory_space<vmem>>, %arg5: memref<64x128xbf16, #tpu.memory_space<vmem>>, %arg6: memref<64x128xf32, #tpu.memory_space<vmem>>) attributes {dimension_semantics = [#tpu.dimension_semantics<parallel>, #tpu.dimension_semantics<arbitrary>], iteration_bounds = array<i64: 2, 1>, scalar_prefetch = 0 : i64, scratch_operands = 1 : i64, tpu.core_type = #tpu.core_type<tc>, window_params = [{transform_indices = @transform_0, window_bounds = array<i64: 64, 4>}, {transform_indices = @transform_1, window_bounds = array<i64: 4, 128>}, {pipeline_mode = #tpu.pipeline_mode<synchronous>, transform_indices = @transform_2, window_bounds = array<i64: 1, 128>}, {transform_indices = @transform_3, window_bounds = array<i64: 64, 128>}]} {
    %c0_i32 = arith.constant 0 : i32
    %0 = arith.cmpi eq, %arg1, %c0_i32 : i32
    %1 = arith.extui %0 : i1 to i32
    %c0_i32_0 = arith.constant 0 : i32
    %2 = arith.cmpi ne, %1, %c0_i32_0 : i32
    scf.if %2 {
      %cst_10 = arith.constant 0.000000e+00 : f32
      %12 = vector.broadcast %cst_10 : f32 to vector<64x128xf32>
      %c0_11 = arith.constant 0 : index
      %c0_12 = arith.constant 0 : index
      %13 = vector.load %arg6[%c0_11, %c0_12] : memref<64x128xf32, #tpu.memory_space<vmem>>, vector<64x128xf32>
      tpu.vector_store %arg6[%c0_11, %c0_12], %12 {strides = array<i32>} : memref<64x128xf32, #tpu.memory_space<vmem>>, vector<64x128xf32>,
    } else {
    }
    %c0 = arith.constant 0 : index
    %c0_1 = arith.constant 0 : index
    %3 = vector.load %arg6[%c0, %c0_1] : memref<64x128xf32, #tpu.memory_space<vmem>>, vector<64x128xf32>
    %c0_2 = arith.constant 0 : index
    %c0_3 = arith.constant 0 : index
    %4 = vector.load %arg2[%c0_2, %c0_3] : memref<64x4xbf16, #tpu.memory_space<vmem>>, vector<64x4xbf16>
    %c0_4 = arith.constant 0 : index
    %c0_5 = arith.constant 0 : index
    %5 = vector.load %arg3[%c0_4, %c0_5] : memref<4x128xbf16, #tpu.memory_space<vmem>>, vector<4x128xbf16>
    %cst = arith.constant dense<0.000000e+00> : vector<64x128xf32>
    %6 = tpu.matmul %4, %5, %cst {dimension_numbers = #tpu.dot_dimension_numbers<[1], [0], [0], [1], [0, 0, 1, 1], [], []>} : vector<64x4xbf16>, vector<4x128xbf16>, vector<64x128xf32> -> vector<64x128xf32>
    %7 = arith.addf %3, %6 : vector<64x128xf32>
    %c0_6 = arith.constant 0 : index
    %c0_7 = arith.constant 0 : index
    %8 = vector.load %arg6[%c0_6, %c0_7] : memref<64x128xf32, #tpu.memory_space<vmem>>, vector<64x128xf32>
    tpu.vector_store %arg6[%c0_6, %c0_7], %7 {strides = array<i32>} : memref<64x128xf32, #tpu.memory_space<vmem>>, vector<64x128xf32>,
    %c0_i32_8 = arith.constant 0 : i32
    %9 = arith.cmpi eq, %arg1, %c0_i32_8 : i32
    %10 = arith.extui %9 : i1 to i32
    %c0_i32_9 = arith.constant 0 : i32
    %11 = arith.cmpi ne, %10, %c0_i32_9 : i32
    scf.if %11 {
      %c0_10 = arith.constant 0 : index
      %c0_11 = arith.constant 0 : index
      %12 = vector.load %arg6[%c0_10, %c0_11] : memref<64x128xf32, #tpu.memory_space<vmem>>, vector<64x128xf32>
      %c0_12 = arith.constant 0 : index
      %c0_13 = arith.constant 0 : index
      %13 = vector.load %arg4[%c0_12, %c0_13] : memref<1x128xf32, #tpu.memory_space<vmem>>, vector<1x128xf32>
      %14 = vector.broadcast %13 : vector<1x128xf32> to vector<64x128xf32>
      %15 = arith.addf %12, %14 : vector<64x128xf32>
      %16 = arith.truncf %15 : vector<64x128xf32> to vector<64x128xbf16>
      %c0_14 = arith.constant 0 : index
      %c0_15 = arith.constant 0 : index
      %17 = vector.load %arg5[%c0_14, %c0_15] : memref<64x128xbf16, #tpu.memory_space<vmem>>, vector<64x128xbf16>
      tpu.vector_store %arg5[%c0_14, %c0_15], %16 {strides = array<i32>} : memref<64x128xbf16, #tpu.memory_space<vmem>>, vector<64x128xbf16>,
    } else {
    }
    return
  }
  func.func @transform_0(%arg0: i32, %arg1: i32) -> (i32, i32) {
    %c0_i32 = arith.constant 0 : i32
    return %arg0, %arg1 : i32, i32
  }
  func.func @transform_1(%arg0: i32, %arg1: i32) -> (i32, i32) {
    %c0_i32 = arith.constant 0 : i32
    %c0_i32_0 = arith.constant 0 : i32
    return %arg1, %c0_i32 : i32, i32
  }
  func.func @transform_2(%arg0: i32, %arg1: i32) -> (i32, i32) {
    %c0_i32 = arith.constant 0 : i32
    %c0_i32_0 = arith.constant 0 : i32
    %c0_i32_1 = arith.constant 0 : i32
    return %c0_i32, %c0_i32_0 : i32, i32
  }
  func.func @transform_3(%arg0: i32, %arg1: i32) -> (i32, i32) {
    %c0_i32 = arith.constant 0 : i32
    %c0_i32_0 = arith.constant 0 : i32
    return %arg0, %c0_i32 : i32, i32
  }
}

module attributes {stable_mosaic.version = 11 : i64} {
  func.func @_matmul_bias_kernel(%arg0: i32, %arg1: i32, %arg2: memref<64x36xbf16, #tpu.memory_space<vmem>>, %arg3: memref<36x128xbf16, #tpu.memory_space<vmem>>, %arg4: memref<1x128xf32, #tpu.memory_space<vmem>>, %arg5: memref<64x128xbf16, #tpu.memory_space<vmem>>, %arg6: memref<64x128xf32, #tpu.memory_space<vmem>>) attributes {dimension_semantics = [#tpu.dimension_semantics<parallel>, #tpu.dimension_semantics<arbitrary>], iteration_bounds = array<i64: 2, 1>, scalar_prefetch = 0 : i64, scratch_operands = 1 : i64, tpu.core_type = #tpu.core_type<tc>, window_params = [{transform_indices = @transform_0, window_bounds = array<i64: 64, 36>}, {transform_indices = @transform_1, window_bounds = array<i64: 36, 128>}, {pipeline_mode = #tpu.pipeline_mode<synchronous>, transform_indices = @transform_2, window_bounds = array<i64: 1, 128>}, {transform_indices = @transform_3, window_bounds = array<i64: 64, 128>}]} {
    %c0_i32 = arith.constant 0 : i32
    %0 = arith.cmpi eq, %arg1, %c0_i32 : i32
    %1 = arith.extui %0 : i1 to i32
    %c0_i32_0 = arith.constant 0 : i32
    %2 = arith.cmpi ne, %1, %c0_i32_0 : i32
    scf.if %2 {
      %cst_10 = arith.constant 0.000000e+00 : f32
      %12 = vector.broadcast %cst_10 : f32 to vector<64x128xf32>
      %c0_11 = arith.constant 0 : index
      %c0_12 = arith.constant 0 : index
      %13 = vector.load %arg6[%c0_11, %c0_12] : memref<64x128xf32, #tpu.memory_space<vmem>>, vector<64x128xf32>
      tpu.vector_store %arg6[%c0_11, %c0_12], %12 {strides = array<i32>} : memref<64x128xf32, #tpu.memory_space<vmem>>, vector<64x128xf32>,
    } else {
    }
    %c0 = arith.constant 0 : index
    %c0_1 = arith.constant 0 : index
    %3 = vector.load %arg6[%c0, %c0_1] : memref<64x128xf32, #tpu.memory_space<vmem>>, vector<64x128xf32>
    %c0_2 = arith.constant 0 : index
    %c0_3 = arith.constant 0 : index
    %4 = vector.load %arg2[%c0_2, %c0_3] : memref<64x36xbf16, #tpu.memory_space<vmem>>, vector<64x36xbf16>
    %c0_4 = arith.constant 0 : index
    %c0_5 = arith.constant 0 : index
    %5 = vector.load %arg3[%c0_4, %c0_5] : memref<36x128xbf16, #tpu.memory_space<vmem>>, vector<36x128xbf16>
    %cst = arith.constant dense<0.000000e+00> : vector<64x128xf32>
    %6 = tpu.matmul %4, %5, %cst {dimension_numbers = #tpu.dot_dimension_numbers<[1], [0], [0], [1], [0, 0, 1, 1], [], []>} : vector<64x36xbf16>, vector<36x128xbf16>, vector<64x128xf32> -> vector<64x128xf32>
    %7 = arith.addf %3, %6 : vector<64x128xf32>
    %c0_6 = arith.constant 0 : index
    %c0_7 = arith.constant 0 : index
    %8 = vector.load %arg6[%c0_6, %c0_7] : memref<64x128xf32, #tpu.memory_space<vmem>>, vector<64x128xf32>
    tpu.vector_store %arg6[%c0_6, %c0_7], %7 {strides = array<i32>} : memref<64x128xf32, #tpu.memory_space<vmem>>, vector<64x128xf32>,
    %c0_i32_8 = arith.constant 0 : i32
    %9 = arith.cmpi eq, %arg1, %c0_i32_8 : i32
    %10 = arith.extui %9 : i1 to i32
    %c0_i32_9 = arith.constant 0 : i32
    %11 = arith.cmpi ne, %10, %c0_i32_9 : i32
    scf.if %11 {
      %c0_10 = arith.constant 0 : index
      %c0_11 = arith.constant 0 : index
      %12 = vector.load %arg6[%c0_10, %c0_11] : memref<64x128xf32, #tpu.memory_space<vmem>>, vector<64x128xf32>
      %c0_12 = arith.constant 0 : index
      %c0_13 = arith.constant 0 : index
      %13 = vector.load %arg4[%c0_12, %c0_13] : memref<1x128xf32, #tpu.memory_space<vmem>>, vector<1x128xf32>
      %14 = vector.broadcast %13 : vector<1x128xf32> to vector<64x128xf32>
      %15 = arith.addf %12, %14 : vector<64x128xf32>
      %cst_14 = arith.constant 0.000000e+00 : f32
      %16 = vector.broadcast %cst_14 : f32 to vector<64x128xf32>
      %17 = arith.maximumf %15, %16 : vector<64x128xf32>
      %18 = arith.truncf %17 : vector<64x128xf32> to vector<64x128xbf16>
      %c0_15 = arith.constant 0 : index
      %c0_16 = arith.constant 0 : index
      %19 = vector.load %arg5[%c0_15, %c0_16] : memref<64x128xbf16, #tpu.memory_space<vmem>>, vector<64x128xbf16>
      tpu.vector_store %arg5[%c0_15, %c0_16], %18 {strides = array<i32>} : memref<64x128xbf16, #tpu.memory_space<vmem>>, vector<64x128xbf16>,
    } else {
    }
    return
  }
  func.func @transform_0(%arg0: i32, %arg1: i32) -> (i32, i32) {
    %c0_i32 = arith.constant 0 : i32
    return %arg0, %arg1 : i32, i32
  }
  func.func @transform_1(%arg0: i32, %arg1: i32) -> (i32, i32) {
    %c0_i32 = arith.constant 0 : i32
    %c0_i32_0 = arith.constant 0 : i32
    return %arg1, %c0_i32 : i32, i32
  }
  func.func @transform_2(%arg0: i32, %arg1: i32) -> (i32, i32) {
    %c0_i32 = arith.constant 0 : i32
    %c0_i32_0 = arith.constant 0 : i32
    %c0_i32_1 = arith.constant 0 : i32
    return %c0_i32, %c0_i32_0 : i32, i32
  }
  func.func @transform_3(%arg0: i32, %arg1: i32) -> (i32, i32) {
    %c0_i32 = arith.constant 0 : i32
    %c0_i32_0 = arith.constant 0 : i32
    return %arg0, %c0_i32 : i32, i32
  }
}

module attributes {stable_mosaic.version = 11 : i64} {
  func.func @_matmul_bias_add_relu_kernel(%arg0: i32, %arg1: i32, %arg2: memref<64x72xbf16, #tpu.memory_space<vmem>>, %arg3: memref<72x128xbf16, #tpu.memory_space<vmem>>, %arg4: memref<1x128xf32, #tpu.memory_space<vmem>>, %arg5: memref<64x128xbf16, #tpu.memory_space<vmem>>, %arg6: memref<64x128xbf16, #tpu.memory_space<vmem>>, %arg7: memref<64x128xf32, #tpu.memory_space<vmem>>) attributes {dimension_semantics = [#tpu.dimension_semantics<parallel>, #tpu.dimension_semantics<arbitrary>], iteration_bounds = array<i64: 2, 1>, scalar_prefetch = 0 : i64, scratch_operands = 1 : i64, tpu.core_type = #tpu.core_type<tc>, window_params = [{transform_indices = @transform_0, window_bounds = array<i64: 64, 72>}, {transform_indices = @transform_1, window_bounds = array<i64: 72, 128>}, {pipeline_mode = #tpu.pipeline_mode<synchronous>, transform_indices = @transform_2, window_bounds = array<i64: 1, 128>}, {transform_indices = @transform_3, window_bounds = array<i64: 64, 128>}, {transform_indices = @transform_4, window_bounds = array<i64: 64, 128>}]} {
    %c0_i32 = arith.constant 0 : i32
    %0 = arith.cmpi eq, %arg1, %c0_i32 : i32
    %1 = arith.extui %0 : i1 to i32
    %c0_i32_0 = arith.constant 0 : i32
    %2 = arith.cmpi ne, %1, %c0_i32_0 : i32
    scf.if %2 {
      %cst_10 = arith.constant 0.000000e+00 : f32
      %12 = vector.broadcast %cst_10 : f32 to vector<64x128xf32>
      %c0_11 = arith.constant 0 : index
      %c0_12 = arith.constant 0 : index
      %13 = vector.load %arg7[%c0_11, %c0_12] : memref<64x128xf32, #tpu.memory_space<vmem>>, vector<64x128xf32>
      tpu.vector_store %arg7[%c0_11, %c0_12], %12 {strides = array<i32>} : memref<64x128xf32, #tpu.memory_space<vmem>>, vector<64x128xf32>,
    } else {
    }
    %c0 = arith.constant 0 : index
    %c0_1 = arith.constant 0 : index
    %3 = vector.load %arg7[%c0, %c0_1] : memref<64x128xf32, #tpu.memory_space<vmem>>, vector<64x128xf32>
    %c0_2 = arith.constant 0 : index
    %c0_3 = arith.constant 0 : index
    %4 = vector.load %arg2[%c0_2, %c0_3] : memref<64x72xbf16, #tpu.memory_space<vmem>>, vector<64x72xbf16>
    %c0_4 = arith.constant 0 : index
    %c0_5 = arith.constant 0 : index
    %5 = vector.load %arg3[%c0_4, %c0_5] : memref<72x128xbf16, #tpu.memory_space<vmem>>, vector<72x128xbf16>
    %cst = arith.constant dense<0.000000e+00> : vector<64x128xf32>
    %6 = tpu.matmul %4, %5, %cst {dimension_numbers = #tpu.dot_dimension_numbers<[1], [0], [0], [1], [0, 0, 1, 1], [], []>} : vector<64x72xbf16>, vector<72x128xbf16>, vector<64x128xf32> -> vector<64x128xf32>
    %7 = arith.addf %3, %6 : vector<64x128xf32>
    %c0_6 = arith.constant 0 : index
    %c0_7 = arith.constant 0 : index
    %8 = vector.load %arg7[%c0_6, %c0_7] : memref<64x128xf32, #tpu.memory_space<vmem>>, vector<64x128xf32>
    tpu.vector_store %arg7[%c0_6, %c0_7], %7 {strides = array<i32>} : memref<64x128xf32, #tpu.memory_space<vmem>>, vector<64x128xf32>,
    %c0_i32_8 = arith.constant 0 : i32
    %9 = arith.cmpi eq, %arg1, %c0_i32_8 : i32
    %10 = arith.extui %9 : i1 to i32
    %c0_i32_9 = arith.constant 0 : i32
    %11 = arith.cmpi ne, %10, %c0_i32_9 : i32
    scf.if %11 {
      %c0_10 = arith.constant 0 : index
      %c0_11 = arith.constant 0 : index
      %12 = vector.load %arg7[%c0_10, %c0_11] : memref<64x128xf32, #tpu.memory_space<vmem>>, vector<64x128xf32>
      %c0_12 = arith.constant 0 : index
      %c0_13 = arith.constant 0 : index
      %13 = vector.load %arg4[%c0_12, %c0_13] : memref<1x128xf32, #tpu.memory_space<vmem>>, vector<1x128xf32>
      %14 = vector.broadcast %13 : vector<1x128xf32> to vector<64x128xf32>
      %15 = arith.addf %12, %14 : vector<64x128xf32>
      %c0_14 = arith.constant 0 : index
      %c0_15 = arith.constant 0 : index
      %16 = vector.load %arg5[%c0_14, %c0_15] : memref<64x128xbf16, #tpu.memory_space<vmem>>, vector<64x128xbf16>
      %17 = arith.extf %16 : vector<64x128xbf16> to vector<64x128xf32>
      %18 = arith.addf %15, %17 : vector<64x128xf32>
      %cst_16 = arith.constant 0.000000e+00 : f32
      %19 = vector.broadcast %cst_16 : f32 to vector<64x128xf32>
      %20 = arith.maximumf %18, %19 : vector<64x128xf32>
      %21 = arith.truncf %20 : vector<64x128xf32> to vector<64x128xbf16>
      %c0_17 = arith.constant 0 : index
      %c0_18 = arith.constant 0 : index
      %22 = vector.load %arg6[%c0_17, %c0_18] : memref<64x128xbf16, #tpu.memory_space<vmem>>, vector<64x128xbf16>
      tpu.vector_store %arg6[%c0_17, %c0_18], %21 {strides = array<i32>} : memref<64x128xbf16, #tpu.memory_space<vmem>>, vector<64x128xbf16>,
    } else {
    }
    return
  }
  func.func @transform_0(%arg0: i32, %arg1: i32) -> (i32, i32) {
    %c0_i32 = arith.constant 0 : i32
    return %arg0, %arg1 : i32, i32
  }
  func.func @transform_1(%arg0: i32, %arg1: i32) -> (i32, i32) {
    %c0_i32 = arith.constant 0 : i32
    %c0_i32_0 = arith.constant 0 : i32
    return %arg1, %c0_i32 : i32, i32
  }
  func.func @transform_2(%arg0: i32, %arg1: i32) -> (i32, i32) {
    %c0_i32 = arith.constant 0 : i32
    %c0_i32_0 = arith.constant 0 : i32
    %c0_i32_1 = arith.constant 0 : i32
    return %c0_i32, %c0_i32_0 : i32, i32
  }
  func.func @transform_3(%arg0: i32, %arg1: i32) -> (i32, i32) {
    %c0_i32 = arith.constant 0 : i32
    %c0_i32_0 = arith.constant 0 : i32
    return %arg0, %c0_i32 : i32, i32
  }
  func.func @transform_4(%arg0: i32, %arg1: i32) -> (i32, i32) {
    %c0_i32 = arith.constant 0 : i32
    %c0_i32_0 = arith.constant 0 : i32
    return %arg0, %c0_i32 : i32, i32
  }
}

</mosaic_0001>

<bundles_post_ra>
// kernel: basic_block_forward.4
= control target key start
LH: loop header
LB: loop body
LE: loop exit
PB: predicated region body
PF: predicated region fallthrough
CT: control target
= control target key end

     0   :  { %s662_s12 = smov 0   ;;  %s664_s13 = smov 0   ;;  %s701_s0 = inlined_call_operand.vmem [shape: bf16[128,4], index: 0, kind: input, shape index: {}]   ;;  %s702_s1 = inlined_call_operand.vmem [shape: bf16[4,128], index: 1, kind: input, shape index: {}]   ;;  %s703_s2 = inlined_call_operand.vmem [shape: f32[1,128], index: 2, kind: input, shape index: {}]   ;;  %s704_s3 = inlined_call_operand.vmem [shape: bf16[128,128], index: 3, kind: output, shape index: {}]  }
   0x1   :  { %s666_s14 = smov 0  }
   0x2 LB: > { %s25_s15 = sadd.s32 1, %s636_s13  ;;  %p516_p0 = scmp.ge.s32.totalorder %s640_s14, 1  ;;  %s640_s14 = sphi %s666_s14, %s13_s14   ;;  %s636_s13 = sphi %s664_s13, %s706_s13   ;;  %s632_s12 = sphi %s662_s12, %s705_s12  }
   0x3   : > { %p27_p1 = scmp.ge.s32.totalorder %s25_s15, 2  ;;  %p164_p2 = scmp.lt.s32.totalorder %s640_s14, 3 }
   0x5   : > { %s708_s15 = smov (%p27_p1, %s25_s15), 0  ;;  %p165_p3 = pnand %p516_p0, %p164_p2 }
   0x6   : > { %s517_s18 = sshll.u32 (!%p165_p3), %s632_s12, 3 }
   0x7   : > { %168 = sbr.rel (%p165_p3) target bundleno = 221 (0xdd), region = 32  ;;  %p196_p4 = scmp.lt.s32.totalorder (!%p165_p3), %s517_s18, 15 }
   0xc   : > { %v243_v0 = vld [vmem:[%s702_s1] sm:$0x3]  ;;  %vm277_vm0 = vcmask 1041408   ;;  %s710_s18 = smov (!%p196_p4, %s517_s18), 15  ;;  %vm264_vm1 = vcmask 31744  }
   0xd   : > { %588 = vmatprep.subr.msk.bf16.mxu0 %vm277_vm0, %v243_v0  ;;  %589 = vmatprep.subr.msk.bf16.mxu1 %vm277_vm0, %v243_v0  ;;  %v279_v1 = vsel %vm277_vm0, %v243_v0, 0  ;;  %s518_s19 = sshll.u32 %s710_s18, 2  ;;  %v529_v8 = vld [vmem:[%s703_s2] ss:$0 sm:$0xff] }
   0xe   : > { %577 = vmatpush3.bf16.msra.mxu0 %v279_v1  ;;  %587 = vmatpush3.bf16.msra.mxu1 %v279_v1  ;;  %s202_s22 = scalar_lea.vmem %s701_s0, %s518_s19  ;;  %s212_s27 = scalar_lea.vmem %s704_s3, %s518_s19 }
   0xf   : > { %v614_v2 = vld [vmem:[%s202_s22] sm:$0xff]   ;;  %v615_v3 = vld [vmem:[%s202_s22 + $0x10] sm:$0xff]   ;;  %v616_v4 = vld [vmem:[%s202_s22 + $0x8] sm:$0xff]  }
  0x10   : > { %578 = vmatprep.mubr.msk.bf16.mxu0 %vm264_vm1, %v614_v2  ;;  %582 = vmatprep.mubr.msk.bf16.mxu1 %vm264_vm1, %v615_v3  ;;  %v617_v5 = vld [vmem:[%s202_s22 + $0x18] sm:$0xff]  }
  0x11   : > { %579 = vmatmul.mubr.msk.bf16.vlgmr.msra.gmra.mxu0 %vm264_vm1, %v616_v4  ;;  %583 = vmatmul.mubr.msk.bf16.vlgmr.msra.gmra.mxu1 %vm264_vm1, %v617_v5 }
  0xd1   : > { %v580_v6 = vpop.f32.mrf.mxu0  ;;  %v584_v7 = vpop.f32.mrf.mxu1 }
  0xd2   : > { %v382_v12 = vadd.f32 %v580_v6, %v529_v8  ;;  %v386_v15 = vadd.f32 %v584_v7, %v529_v8 }
  0xd3   : > { %v315_v9 = vpop.f32.mrf.mxu0  ;;  %v331_v10 = vpop.f32.mrf.mxu1 }
  0xd4   : > { %v380_v18 = vadd.f32 %v529_v8, %v315_v9  ;;  %v384_v22 = vadd.f32 %v529_v8, %v331_v10 }
  0xd5   : > { %v581_v11 = vpop.f32.mrf.mxu0  ;;  %v585_v14 = vpop.f32.mrf.mxu1 }
  0xd6   : > { %v383_v13 = vadd.f32 %v581_v11, %v529_v8  ;;  %v387_v16 = vadd.f32 %v585_v14, %v529_v8 }
  0xd7   : > { %v318_v17 = vpop.f32.mrf.mxu0  ;;  %v334_v21 = vpop.f32.mrf.mxu1 }
  0xd8   : > { %v556_v19 = vpack.c.bf16 %v383_v13, %v382_v12  ;;  %v381_v20 = vadd.f32 %v529_v8, %v318_v17  ;;  %v566_v23 = vpack.c.bf16 %v387_v16, %v386_v15  ;;  %v385_v24 = vadd.f32 %v529_v8, %v334_v21 }
  0xda   : > { %568 = vst [vmem:[%s212_s27 + $0x8] sm:$0xff] %v556_v19   ;;  %v551_v25 = vpack.c.bf16 %v381_v20, %v380_v18  ;;  %570 = vst [vmem:[%s212_s27 + $0x18] sm:$0xff] %v566_v23   ;;  %v561_v26 = vpack.c.bf16 %v385_v24, %v384_v22 }
  0xdc   : > { %552 = vst [vmem:[%s212_s27] sm:$0xff] %v551_v25   ;;  %569 = vst [vmem:[%s212_s27 + $0x10] sm:$0xff] %v561_v26  }
  0xdd PF: > { %s13_s14 = sadd.s32 1, %s640_s14   ;;  %s705_s12 = smov %s636_s13 }
  0xde   : > { %p10_p5 = scmp.ge.s32.totalorder %s13_s14, 4   ;;  %s706_s13 = smov %s708_s15 }
  0xe0   :  { %12 = sbr.rel (!%p10_p5) target bundleno = 2 (0x2), region = 73 }

// kernel: basic_block_forward.3
= control target key start
LH: loop header
LB: loop body
LE: loop exit
PB: predicated region body
PF: predicated region fallthrough
CT: control target
= control target key end

     0   :  { %s710_s12 = smov 0   ;;  %s712_s13 = smov 0   ;;  %s762_s0 = inlined_call_operand.vmem [shape: bf16[128,36], index: 0, kind: input, shape index: {}]   ;;  %s763_s1 = inlined_call_operand.vmem [shape: bf16[36,128], index: 1, kind: input, shape index: {}]   ;;  %s764_s2 = inlined_call_operand.vmem [shape: f32[1,128], index: 2, kind: input, shape index: {}]   ;;  %s765_s3 = inlined_call_operand.vmem [shape: bf16[128,128], index: 3, kind: output, shape index: {}]  }
   0x1   :  { %s714_s14 = smov 0  }
   0x2 LB: > { %s25_s15 = sadd.s32 1, %s684_s13  ;;  %p548_p0 = scmp.ge.s32.totalorder %s688_s14, 1  ;;  %s688_s14 = sphi %s714_s14, %s13_s14   ;;  %s684_s13 = sphi %s712_s13, %s767_s13   ;;  %s680_s12 = sphi %s710_s12, %s766_s12  }
   0x3   : > { %p27_p1 = scmp.ge.s32.totalorder %s25_s15, 2  ;;  %p166_p2 = scmp.lt.s32.totalorder %s688_s14, 3 }
   0x5   : > { %s769_s15 = smov (%p27_p1, %s25_s15), 0  ;;  %p167_p3 = pnand %p548_p0, %p166_p2 }
   0x6   : > { %s549_s20 = sshll.u32 (!%p167_p3), %s680_s12, 3 }
   0x7   : > { %170 = sbr.rel (%p167_p3) target bundleno = 231 (0xe7), region = 32  ;;  %p199_p4 = scmp.lt.s32.totalorder (!%p167_p3), %s549_s20, 15 }
   0xc   : > { %v659_v0 = vld [vmem:[%s763_s1 + $0x10] ss:$0 sps:$4 sm:$0x33]   ;;  %vm301_vm0 = vcmask 1041408   ;;  %v660_v1 = vld [vmem:[%s763_s1 + $0x8] sm:$0xff]   ;;  %v661_v3 = vld [vmem:[%s763_s1] sm:$0xff]  }
   0xd   : > { %633 = vmatprep.subr.msk.bf16.mxu0 %vm301_vm0, %v659_v0  ;;  %634 = vmatprep.subr.msk.bf16.mxu1 %vm301_vm0, %v659_v0  ;;  %v303_v2 = vsel %vm301_vm0, %v659_v0, 0  ;;  %s771_s20 = smov (!%p199_p4, %s549_s20), 15  ;;  %vm288_vm1 = vcmask 293888   ;;  %v564_v8 = vld [vmem:[%s764_s2] ss:$0 sm:$0xff] }
   0xe   : > { %614 = vmatpush3.bf16.msra.mxu0 %v303_v2  ;;  %630 = vmatpush3.bf16.msra.mxu1 %v303_v2  ;;  %s550_s23 = sshll.u32 %s771_s20, 2 }
   0xf   : > { %615 = vmatprep.subr.bf16.mxu0 %v660_v1  ;;  %628 = vmatprep.subr.bf16.mxu1 %v660_v1  ;;  %s205_s26 = scalar_lea.vmem %s762_s0, %s550_s23  ;;  %s217_s4 = scalar_lea.vmem %s765_s3, %s550_s23 }
  0x10   : > { %v662_v4 = vld [vmem:[%s205_s26] sm:$0xff]   ;;  %v663_v5 = vld [vmem:[%s205_s26 + $0x10] sm:$0xff]   ;;  %v664_v6 = vld [vmem:[%s205_s26 + $0x8] sm:$0xff]  }
  0x11   : > { %619 = vmatprep.mubr.msk.bf16.mxu0 %vm288_vm1, %v662_v4  ;;  %623 = vmatprep.mubr.msk.bf16.mxu1 %vm288_vm1, %v663_v5  ;;  %v665_v7 = vld [vmem:[%s205_s26 + $0x18] sm:$0xff]  }
  0x12   : > { %616 = vmatpush3.bf16.msra.mxu0 %v660_v1  ;;  %631 = vmatpush3.bf16.msra.mxu1 %v660_v1 }
  0x13   : > { %617 = vmatprep.subr.bf16.mxu0 %v661_v3  ;;  %629 = vmatprep.subr.bf16.mxu1 %v661_v3 }
  0x16   : > { %618 = vmatpush3.bf16.msra.mxu0 %v661_v3  ;;  %632 = vmatpush3.bf16.msra.mxu1 %v661_v3 }
  0x19   : > { %620 = vmatmul.mubr.msk.bf16.vlgmr.msra.gmra.mxu0 %vm288_vm1, %v664_v6  ;;  %624 = vmatmul.mubr.msk.bf16.vlgmr.msra.gmra.mxu1 %vm288_vm1, %v665_v7 }
  0xd9   : > { %v621_v9 = vpop.f32.mrf.mxu0  ;;  %v625_v10 = vpop.f32.mrf.mxu1 }
  0xda   : > { %v406_v11 = vadd.f32 %v621_v9, %v564_v8  ;;  %v410_v12 = vadd.f32 %v625_v10, %v564_v8 }
  0xdb   : > { %v339_v13 = vpop.f32.mrf.mxu0  ;;  %v355_v14 = vpop.f32.mrf.mxu1 }
  0xdc   : > { %v404_v15 = vadd.f32 %v564_v8, %v339_v13  ;;  %v408_v16 = vadd.f32 %v564_v8, %v355_v14  ;;  %v414_v21 = vmax.f32 %v406_v11, 0.0  ;;  %v418_v22 = vmax.f32 %v410_v12, 0.0 }
  0xdd   : > { %v622_v17 = vpop.f32.mrf.mxu0  ;;  %v626_v18 = vpop.f32.mrf.mxu1 }
  0xde   : > { %v407_v19 = vadd.f32 %v622_v17, %v564_v8  ;;  %v411_v20 = vadd.f32 %v626_v18, %v564_v8  ;;  %v412_v29 = vmax.f32 %v404_v15, 0.0  ;;  %v416_v30 = vmax.f32 %v408_v16, 0.0 }
  0xdf   : > { %v342_v23 = vpop.f32.mrf.mxu0  ;;  %v358_v24 = vpop.f32.mrf.mxu1 }
  0xe0   : > { %v415_v25 = vmax.f32 %v407_v19, 0.0  ;;  %v419_v26 = vmax.f32 %v411_v20, 0.0  ;;  %v405_v27 = vadd.f32 %v564_v8, %v342_v23  ;;  %v409_v28 = vadd.f32 %v564_v8, %v358_v24 }
  0xe2   : > { %v591_v31 = vpack.c.bf16 %v415_v25, %v414_v21  ;;  %v601_v32 = vpack.c.bf16 %v419_v26, %v418_v22  ;;  %v413_v33 = vmax.f32 %v405_v27, 0.0  ;;  %v417_v34 = vmax.f32 %v409_v28, 0.0 }
  0xe4   : > { %603 = vst [vmem:[%s217_s4 + $0x8] sm:$0xff] %v591_v31   ;;  %605 = vst [vmem:[%s217_s4 + $0x18] sm:$0xff] %v601_v32   ;;  %v586_v35 = vpack.c.bf16 %v413_v33, %v412_v29  ;;  %v596_v36 = vpack.c.bf16 %v417_v34, %v416_v30 }
  0xe6   : > { %587 = vst [vmem:[%s217_s4] sm:$0xff] %v586_v35   ;;  %604 = vst [vmem:[%s217_s4 + $0x10] sm:$0xff] %v596_v36  }
  0xe7 PF: > { %s13_s14 = sadd.s32 1, %s688_s14   ;;  %s766_s12 = smov %s684_s13 }
  0xe8   : > { %p10_p5 = scmp.ge.s32.totalorder %s13_s14, 4   ;;  %s767_s13 = smov %s769_s15 }
  0xea   :  { %12 = sbr.rel (!%p10_p5) target bundleno = 2 (0x2), region = 73 }

// kernel: basic_block_forward.5
= control target key start
LH: loop header
LB: loop body
LE: loop exit
PB: predicated region body
PF: predicated region fallthrough
CT: control target
= control target key end

     0   :  { %s851_s15 = smov 0   ;;  %s853_s16 = smov 0   ;;  %s914_s0 = inlined_call_operand.vmem [shape: bf16[128,72], index: 0, kind: input, shape index: {}]   ;;  %s915_s1 = inlined_call_operand.vmem [shape: bf16[72,128], index: 1, kind: input, shape index: {}]   ;;  %s916_s2 = inlined_call_operand.vmem [shape: f32[1,128], index: 2, kind: input, shape index: {}]   ;;  %s917_s3 = inlined_call_operand.vmem [shape: bf16[128,128], index: 3, kind: input, shape index: {}]   ;;  %s918_s4 = inlined_call_operand.vmem [shape: bf16[128,128], index: 4, kind: output, shape index: {}]  }
   0x1   :  { %s855_s17 = smov 0  }
   0x2 LB: > { %s26_s18 = sadd.s32 1, %s820_s16  ;;  %p649_p0 = scmp.ge.s32.totalorder %s824_s17, 1  ;;  %s824_s17 = sphi %s855_s17, %s14_s17   ;;  %s820_s16 = sphi %s853_s16, %s920_s16   ;;  %s816_s15 = sphi %s851_s15, %s919_s15  }
   0x3   : > { %p28_p1 = scmp.ge.s32.totalorder %s26_s18, 2  ;;  %p202_p2 = scmp.lt.s32.totalorder %s824_s17, 3 }
   0x5   : > { %s922_s18 = smov (%p28_p1, %s26_s18), 0  ;;  %p203_p3 = pnand %p649_p0, %p202_p2 }
   0x6   : > { %s650_s23 = sshll.u32 (!%p203_p3), %s816_s15, 3 }
   0x7   : > { %206 = sbr.rel (%p203_p3) target bundleno = 241 (0xf1), region = 36  ;;  %p242_p4 = scmp.lt.s32.totalorder (!%p203_p3), %s650_s23, 15 }
   0xc   : > { %v793_v0 = vld [vmem:[%s915_s1 + $0x20] ss:$0 sps:$4 sm:$0xff]   ;;  %vm366_vm0 = vcmask 1043456   ;;  %v794_v1 = vld [vmem:[%s915_s1 + $0x18] sm:$0xff]   ;;  %v795_v3 = vld [vmem:[%s915_s1 + $0x10] sm:$0xff]   ;;  %s924_s23 = smov (!%p242_p4, %s650_s23), 15 }
   0xd   : > { %767 = vmatprep.subr.msk.bf16.mxu0 %vm366_vm0, %v793_v0  ;;  %768 = vmatprep.subr.msk.bf16.mxu1 %vm366_vm0, %v793_v0  ;;  %v368_v2 = vsel %vm366_vm0, %v793_v0, 0  ;;  %v796_v4 = vld [vmem:[%s915_s1 + $0x8] sm:$0xff]   ;;  %s881_s28 = sshll.u32 %s924_s23, 2  ;;  %vm353_vm1 = vcmask 588800   ;;  %v797_v7 = vld [vmem:[%s915_s1] sm:$0xff]  }
   0xe   : > { %740 = vmatpush3.bf16.msra.mxu0 %v368_v2  ;;  %762 = vmatpush3.bf16.msra.mxu1 %v368_v2  ;;  %s248_s5 = scalar_lea.vmem %s914_s0, %s881_s28  ;;  %s260_s10 = scalar_lea.vmem %s917_s3, %s881_s28  ;;  %v669_v10 = vld [vmem:[%s916_s2] ss:$0 sm:$0xff] }
   0xf   : > { %741 = vmatprep.subr.bf16.mxu0 %v794_v1  ;;  %758 = vmatprep.subr.bf16.mxu1 %v794_v1  ;;  %v798_v5 = vld [vmem:[%s248_s5] sm:$0xff]   ;;  %v799_v6 = vld [vmem:[%s248_s5 + $0x10] sm:$0xff]   ;;  %v800_v8 = vld [vmem:[%s248_s5 + $0x8] sm:$0xff]   ;;  %s266_s15 = scalar_lea.vmem %s918_s4, %s881_s28 }
  0x10   : > { %749 = vmatprep.mubr.msk.bf16.mxu0 %vm353_vm1, %v798_v5  ;;  %753 = vmatprep.mubr.msk.bf16.mxu1 %vm353_vm1, %v799_v6  ;;  %v801_v9 = vld [vmem:[%s248_s5 + $0x18] sm:$0xff]   ;;  %v724_v11 = vld [vmem:[%s260_s10 + $0x8] sm:$0xff]   ;;  %v689_v15 = vld [vmem:[%s260_s10] sm:$0xff]  }
  0x11   : > { %v726_v12 = vld [vmem:[%s260_s10 + $0x18] sm:$0xff]   ;;  %v725_v16 = vld [vmem:[%s260_s10 + $0x10] sm:$0xff]   ;;  %v694_v18 = vunpack.c.l.bf16 %v724_v11  ;;  %v690_v24 = vunpack.c.l.bf16 %v689_v15  ;;  %v695_v28 = vunpack.c.h.bf16 %v724_v11  ;;  %v691_v31 = vunpack.c.h.bf16 %v689_v15 }
  0x12   : > { %742 = vmatpush3.bf16.msra.mxu0 %v794_v1  ;;  %763 = vmatpush3.bf16.msra.mxu1 %v794_v1  ;;  %v702_v20 = vunpack.c.l.bf16 %v726_v12  ;;  %v698_v26 = vunpack.c.l.bf16 %v725_v16  ;;  %v703_v30 = vunpack.c.h.bf16 %v726_v12  ;;  %v699_v32 = vunpack.c.h.bf16 %v725_v16 }
  0x13   : > { %743 = vmatprep.subr.bf16.mxu0 %v795_v3  ;;  %759 = vmatprep.subr.bf16.mxu1 %v795_v3 }
  0x16   : > { %744 = vmatpush3.bf16.msra.mxu0 %v795_v3  ;;  %764 = vmatpush3.bf16.msra.mxu1 %v795_v3 }
  0x17   : > { %745 = vmatprep.subr.bf16.mxu0 %v796_v4  ;;  %760 = vmatprep.subr.bf16.mxu1 %v796_v4 }
  0x1a   : > { %746 = vmatpush3.bf16.msra.mxu0 %v796_v4  ;;  %765 = vmatpush3.bf16.msra.mxu1 %v796_v4 }
  0x1b   : > { %747 = vmatprep.subr.bf16.mxu0 %v797_v7  ;;  %761 = vmatprep.subr.bf16.mxu1 %v797_v7 }
  0x1e   : > { %748 = vmatpush3.bf16.msra.mxu0 %v797_v7  ;;  %766 = vmatpush3.bf16.msra.mxu1 %v797_v7 }
  0x21   : > { %750 = vmatmul.mubr.msk.bf16.vlgmr.msra.gmra.mxu0 %vm353_vm1, %v800_v8  ;;  %754 = vmatmul.mubr.msk.bf16.vlgmr.msra.gmra.mxu1 %vm353_vm1, %v801_v9 }
  0xe1   : > { %v751_v13 = vpop.f32.mrf.mxu0  ;;  %v755_v14 = vpop.f32.mrf.mxu1 }
  0xe2   : > { %v471_v17 = vadd.f32 %v751_v13, %v669_v10  ;;  %v475_v19 = vadd.f32 %v755_v14, %v669_v10 }
  0xe3   : > { %v404_v21 = vpop.f32.mrf.mxu0  ;;  %v420_v22 = vpop.f32.mrf.mxu1 }
  0xe4   : > { %v469_v23 = vadd.f32 %v669_v10, %v404_v21  ;;  %v473_v25 = vadd.f32 %v669_v10, %v420_v22  ;;  %v495_v33 = vadd.f32 %v694_v18, %v471_v17  ;;  %v499_v34 = vadd.f32 %v702_v20, %v475_v19 }
  0xe5   : > { %v752_v27 = vpop.f32.mrf.mxu0  ;;  %v756_v29 = vpop.f32.mrf.mxu1 }
  0xe6   : > { %v472_v35 = vadd.f32 %v752_v27, %v669_v10  ;;  %v476_v36 = vadd.f32 %v756_v29, %v669_v10  ;;  %v493_v39 = vadd.f32 %v690_v24, %v469_v23  ;;  %v497_v40 = vadd.f32 %v698_v26, %v473_v25 }
  0xe7   : > { %v407_v37 = vpop.f32.mrf.mxu0  ;;  %v423_v38 = vpop.f32.mrf.mxu1  ;;  %v503_v47 = vmax.f32 %v495_v33, 0.0  ;;  %v507_v48 = vmax.f32 %v499_v34, 0.0 }
  0xe8   : > { %v470_v41 = vadd.f32 %v669_v10, %v407_v37  ;;  %v474_v42 = vadd.f32 %v669_v10, %v423_v38  ;;  %v496_v43 = vadd.f32 %v695_v28, %v472_v35  ;;  %v500_v44 = vadd.f32 %v703_v30, %v476_v36 }
  0xe9   : > { %v501_v51 = vmax.f32 %v493_v39, 0.0  ;;  %v505_v52 = vmax.f32 %v497_v40, 0.0 }
  0xea   : > { %v494_v45 = vadd.f32 %v691_v31, %v470_v41  ;;  %v498_v46 = vadd.f32 %v699_v32, %v474_v42  ;;  %v504_v49 = vmax.f32 %v496_v43, 0.0  ;;  %v508_v50 = vmax.f32 %v500_v44, 0.0 }
  0xec   : > { %v502_v53 = vmax.f32 %v494_v45, 0.0  ;;  %v506_v54 = vmax.f32 %v498_v46, 0.0  ;;  %v712_v55 = vpack.c.bf16 %v504_v49, %v503_v47  ;;  %v722_v56 = vpack.c.bf16 %v508_v50, %v507_v48 }
  0xee   : > { %v707_v57 = vpack.c.bf16 %v502_v53, %v501_v51  ;;  %v717_v58 = vpack.c.bf16 %v506_v54, %v505_v52  ;;  %727 = vst [vmem:[%s266_s15 + $0x8] sm:$0xff] %v712_v55   ;;  %729 = vst [vmem:[%s266_s15 + $0x18] sm:$0xff] %v722_v56  }
  0xf0   : > { %708 = vst [vmem:[%s266_s15] sm:$0xff] %v707_v57   ;;  %728 = vst [vmem:[%s266_s15 + $0x10] sm:$0xff] %v717_v58  }
  0xf1 PF: > { %s14_s17 = sadd.s32 1, %s824_s17   ;;  %s919_s15 = smov %s820_s16 }
  0xf2   : > { %p11_p5 = scmp.ge.s32.totalorder %s14_s17, 4   ;;  %s920_s16 = smov %s922_s18 }
  0xf4   :  { %13 = sbr.rel (!%p11_p5) target bundleno = 2 (0x2), region = 80 }

</bundles_post_ra>
